<compile_context>
chip_gen: v7x
topology: tpu7x:2x2x1
jax: 0.10.0
libtpu: 0.0.40
codegen_flags: <defaults>
</compile_context>

<pallas_src>
import functools
import math

import jax
import jax.numpy as jnp
from jax.experimental import pallas as pl
from jax.experimental.pallas import tpu as pltpu

_LANES = 128


def _round_up(v: int, m: int) -> int:
    return ((v + m - 1) // m) * m


# ----------------------------------------------------------------------------
# Kernel 1: the executed hot path of SAGE.forward  ->  relu(x + identity)
# (identity == x because the conv branch is dead), fused into one elementwise
# Pallas kernel.  The wrapper presents the data as a lane-dense (rows, 128)
# slab so loads/stores are unmasked, tiles rows for HBM/compute pipelining,
# and aliases input/output (pure elementwise, shape preserving).
# ----------------------------------------------------------------------------
def _residual_relu_kernel(x_ref, o_ref):
    y = x_ref[...]
    y = y + y                                   # x = x + identity
    o_ref[...] = jnp.maximum(y, jnp.zeros_like(y))   # self.act (ReLU assumed)


@jax.jit
def residual_relu(x):
    n, d = x.shape
    total = n * d
    rows = -(-total // _LANES)                       # ceil(total / 128)
    tile_rows = 512 if rows >= 512 else _round_up(rows, 8)
    padded_rows = _round_up(rows, tile_rows)         # exact tiling, no remainder

    flat = jnp.pad(x.reshape(-1), (0, padded_rows * _LANES - total))
    slab = flat.reshape(padded_rows, _LANES)         # lane-dense layout

    out = pl.pallas_call(
        _residual_relu_kernel,
        out_shape=jax.ShapeDtypeStruct((padded_rows, _LANES), x.dtype),
        grid_spec=pl.GridSpec(
            grid=(padded_rows // tile_rows,),
            in_specs=[pl.BlockSpec((tile_rows, _LANES), lambda i: (i, 0))],
            out_specs=pl.BlockSpec((tile_rows, _LANES), lambda i: (i, 0)),
        ),
        input_output_aliases={0: 0},
        compiler_params=pltpu.CompilerParams(
            dimension_semantics=("parallel",)),
    )(slab)
    return out.reshape(-1)[:total].reshape(n, d)


# ----------------------------------------------------------------------------
# Kernel 2: SAGEConv (mean aggregation) — the module's sgconv, provided for
# completeness even though the reference forward's hasattr-guard skips it.
#   out = x @ W_l + mean_neighbors(x) @ W_r + b
# Tiled as:
#   grid = (rows/TM, neighbors/TK); acc (TM, d_in) f32 scratch accumulates
#   agg = A_norm @ x across the K axis; at the last K step the projection
#   against the fused [W_l; W_r] buffer is applied and the lane-dense
#   (d_out padded to 128) tile is written once.
# ----------------------------------------------------------------------------
_TM = 128   # output-row tile: MXU-aligned on v5e (128x128) and v6e/v7x (256x256)
_TK = 256   # contraction tile over the neighbor axis


def _sageconv_kernel(adj_ref, xk_ref, xi_ref, w_ref, b_ref, o_ref, acc_ref):
    k = pl.program_id(1)

    @pl.when(k == 0)
    def _init():
        acc_ref[...] = jnp.zeros_like(acc_ref)

    # Mean-neighbor aggregation, tiled over the (padded) neighbor axis.
    acc_ref[...] += jnp.dot(adj_ref[...], xk_ref[...],
                            preferred_element_type=jnp.float32)

    @pl.when(k == pl.num_programs(1) - 1)
    def _finalize():
        xi = xi_ref[...]
        d_in = xi.shape[-1]
        if d_in % _LANES == 0:
            # Fused single MXU call with K = 2*d_in (lane-aligned concat).
            cat = jnp.concatenate(
                [xi.astype(jnp.float32), acc_ref[...]], axis=-1
            ).astype(jnp.bfloat16)
            proj = jnp.dot(cat, w_ref[...],
                           preferred_element_type=jnp.float32)
        else:
            # d_in < 128 lanes: an unaligned lane concat would force a vreg
            # relayout that costs more than fusing the skinny K buys, so use
            # two row-sliced dots against the single fused [W_l; W_r] buffer
            # (one weight DMA stream either way).
            proj = (jnp.dot(xi, w_ref[:d_in, :],
                            preferred_element_type=jnp.float32)
                    + jnp.dot(acc_ref[...].astype(jnp.bfloat16),
                              w_ref[d_in:, :],
                              preferred_element_type=jnp.float32))
        o_ref[...] = (proj + b_ref[...]).astype(o_ref.dtype)


def _mean_adjacency(n, edge_index):
    # Row-normalized dense adjacency: mean over incoming messages (PyG 'mean').
    src, dst = edge_index[0], edge_index[1]
    adj = jnp.zeros((n, n), jnp.float32).at[dst, src].add(1.0)
    deg = jnp.maximum(jnp.sum(adj, axis=1, keepdims=True), 1.0)
    return adj / deg


@functools.partial(jax.jit, static_argnames=("tm", "tk"))
def sageconv_apply(x, edge_index, w_l, w_r, b, *, tm=_TM, tk=_TK):
    """out = x @ W_l + mean_nbrs(x) @ W_r + b  (dead branch in SAGE.forward)."""
    n, d_in = x.shape
    d_out = w_l.shape[1]

    # TODO(synk): dense adjacency is O(n^2); for large sparse graphs replace
    # with a CSR scalar-prefetch + row-gather aggregation kernel.
    adj = _mean_adjacency(n, edge_index)

    n_pad = _round_up(n, math.lcm(tm, tk))
    d_out_pad = _round_up(d_out, _LANES)          # lane-dense output stores

    # bf16 MXU inputs (f32 accumulation inside the kernel), zero-padded tiles.
    adj_p = jnp.zeros((n_pad, n_pad), jnp.bfloat16).at[:n, :n].set(
        adj.astype(jnp.bfloat16))
    x_p = jnp.zeros((n_pad, d_in), jnp.bfloat16).at[:n, :].set(
        x.astype(jnp.bfloat16))
    w_cat = jnp.concatenate([w_l, w_r], axis=0)            # (2*d_in, d_out)
    w_p = jnp.zeros((2 * d_in, d_out_pad), jnp.bfloat16).at[:, :d_out].set(
        w_cat.astype(jnp.bfloat16))
    b_p = jnp.zeros((1, d_out_pad), jnp.float32).at[0, :d_out].set(b)

    grid = (n_pad // tm, n_pad // tk)
    cost = pl.CostEstimate(
        flops=2 * n_pad * n_pad * d_in + 2 * n_pad * (2 * d_in) * d_out_pad,
        transcendentals=0,
        bytes_accessed=(adj_p.size * 2 + 2 * x_p.size * 2 + w_p.size * 2
                        + b_p.size * 4 + n_pad * d_out_pad * 4),
    )

    out = pl.pallas_call(
        _sageconv_kernel,
        out_shape=jax.ShapeDtypeStruct((n_pad, d_out_pad), jnp.float32),
        grid_spec=pltpu.PrefetchScalarGridSpec(
            num_scalar_prefetch=0,
            grid=grid,
            in_specs=[
                pl.BlockSpec((tm, tk), lambda i, k: (i, k)),        # adj tile
                pl.BlockSpec((tk, d_in), lambda i, k: (k, 0)),      # x, K rows
                pl.BlockSpec((tm, d_in), lambda i, k: (i, 0)),      # x, M rows
                pl.BlockSpec((2 * d_in, d_out_pad), lambda i, k: (0, 0)),
                pl.BlockSpec((1, d_out_pad), lambda i, k: (0, 0)),
            ],
            out_specs=pl.BlockSpec((tm, d_out_pad), lambda i, k: (i, 0)),
            scratch_shapes=[pltpu.VMEM((tm, d_in), jnp.float32)],
        ),
        compiler_params=pltpu.CompilerParams(
            dimension_semantics=("parallel", "arbitrary")),
        cost_estimate=cost,
    )(adj_p, x_p, x_p, w_p, b_p)

    return out[:n, :d_out].astype(x.dtype)


# ----------------------------------------------------------------------------
# Module wrapper mirroring SAGE
# ----------------------------------------------------------------------------
class SAGEPallas:
    def __init__(self, node_size, bond_size, extend_dim, dropout, key):
        del bond_size, dropout  # unused by the reference forward
        out_dim = node_size * extend_dim
        k1, k2, k3 = jax.random.split(key, 3)
        # Deterministic synthetic init (kaiming-uniform-like bounds).
        bound = (1.0 / node_size) ** 0.5
        self.w_l = jax.random.uniform(k1, (node_size, out_dim), jnp.float32,
                                      -bound, bound)
        self.w_r = jax.random.uniform(k2, (node_size, out_dim), jnp.float32,
                                      -bound, bound)
        self.b = jax.random.uniform(k3, (out_dim,), jnp.float32, -bound, bound)

    def forward(self, x, edge_index, edge_attr, h, batch):
        del edge_index, edge_attr, batch
        # hasattr(self, 'norm_block') is False in the reference module, so the
        # norm_block + sgconv branch never runs: x stays unchanged before the
        # residual add.
        x = residual_relu(x)          # relu(x + identity), fused in Pallas
        return x, h

    @property
    def name(self):
        return 'SAGE'


if __name__ == "__main__":
    node_size = 32
    bond_size = 6
    extend_dim = 2
    num_nodes = 8
    num_edges = 16

    key = jax.random.PRNGKey(0)
    kx, kh, ke, ka, kp = jax.random.split(key, 5)

    x = jax.random.normal(kx, (num_nodes, node_size), jnp.float32)
    h = jax.random.normal(kh, (num_nodes, node_size), jnp.float32)
    edge_index = jax.random.randint(ke, (2, num_edges), 0, num_nodes,
                                    dtype=jnp.int32)
    edge_attr = jax.random.normal(ka, (num_edges, bond_size), jnp.float32)
    batch = jnp.zeros((num_nodes,), jnp.int32)

    model = SAGEPallas(node_size, bond_size, extend_dim, dropout=0.1, key=kp)

    out_x, out_h = model.forward(x, edge_index, edge_attr, h, batch)
    out_x = jax.block_until_ready(out_x)
    out_h = jax.block_until_ready(out_h)

    # Correctness check of the executed path against plain JAX.
    ref = jnp.maximum(x + x, 0.0)
    assert out_x.shape == (num_nodes, node_size)
    assert bool(jnp.allclose(out_x, ref, atol=1e-6))
    assert bool(jnp.array_equal(out_h, h))

    # Check the (dead-branch) tiled SAGEConv Pallas kernel against a bf16-
    # emulated plain-JAX reference.
    conv_out = jax.block_until_ready(
        sageconv_apply(x, edge_index, model.w_l, model.w_r, model.b))
    assert conv_out.shape == (num_nodes, node_size * extend_dim)

    adj = _mean_adjacency(num_nodes, edge_index)
    xb = x.astype(jnp.bfloat16)
    agg = jnp.dot(adj.astype(jnp.bfloat16), xb,
                  preferred_element_type=jnp.float32)
    cat = jnp.concatenate([xb, agg.astype(jnp.bfloat16)], axis=-1)
    w_cat = jnp.concatenate([model.w_l, model.w_r], axis=0).astype(jnp.bfloat16)
    conv_ref = (jnp.dot(cat, w_cat, preferred_element_type=jnp.float32)
                + model.b[None, :])
    assert bool(jnp.allclose(conv_out, conv_ref, atol=2e-2, rtol=2e-2))

    print("KERNEL_OK")
</pallas_src>

<mosaic_0001>
module attributes {stable_mosaic.version = 11 : i64} {
  func.func @_residual_relu_kernel(%arg0: i32, %arg1: memref<8x128xf32, #tpu.memory_space<vmem>>, %arg2: memref<8x128xf32, #tpu.memory_space<vmem>>) attributes {dimension_semantics = [#tpu.dimension_semantics<parallel>], iteration_bounds = array<i64: 1>, scalar_prefetch = 0 : i64, scratch_operands = 0 : i64, tpu.core_type = #tpu.core_type<tc>, window_params = [{transform_indices = @transform_0, window_bounds = array<i64: 8, 128>}, {transform_indices = @transform_1, window_bounds = array<i64: 8, 128>}]} {
    %c0 = arith.constant 0 : index
    %c0_0 = arith.constant 0 : index
    %0 = vector.load %arg1[%c0, %c0_0] : memref<8x128xf32, #tpu.memory_space<vmem>>, vector<8x128xf32>
    %1 = arith.addf %0, %0 : vector<8x128xf32>
    %cst = arith.constant 0.000000e+00 : f32
    %2 = vector.broadcast %cst : f32 to vector<8x128xf32>
    %3 = arith.maximumf %1, %2 : vector<8x128xf32>
    %c0_1 = arith.constant 0 : index
    %c0_2 = arith.constant 0 : index
    %4 = vector.load %arg2[%c0_1, %c0_2] : memref<8x128xf32, #tpu.memory_space<vmem>>, vector<8x128xf32>
    tpu.vector_store %arg2[%c0_1, %c0_2], %3 {strides = array<i32>} : memref<8x128xf32, #tpu.memory_space<vmem>>, vector<8x128xf32>,
    return
  }
  func.func @transform_0(%arg0: i32) -> (i32, i32) {
    %c0_i32 = arith.constant 0 : i32
    %c0_i32_0 = arith.constant 0 : i32
    return %arg0, %c0_i32 : i32, i32
  }
  func.func @transform_1(%arg0: i32) -> (i32, i32) {
    %c0_i32 = arith.constant 0 : i32
    %c0_i32_0 = arith.constant 0 : i32
    return %arg0, %c0_i32 : i32, i32
  }
}

</mosaic_0001>

<bundles_post_ra>
// kernel: residual_relu.1
= control target key start
LH: loop header
LB: loop body
LE: loop exit
PB: predicated region body
PF: predicated region fallthrough
CT: control target
= control target key end

     0   :  { %s32_s0 = inlined_call_operand.vmem [shape: f32[8,128], index: 0, kind: input, shape index: {}, may-alias: {0,1}]   ;;  %s33_s1 = inlined_call_operand.vmem [shape: f32[8,128], index: 1, kind: output, shape index: {}, may-alias: {0,1}]  }
   0x1   :  { %v8_v0 = vld [vmem:[%s32_s0] sm:$0xff] }
   0x2   :  { %v9_v1 = vadd.f32 %v8_v0, %v8_v0 }
   0x4   :  { %v10_v2 = vmax.f32 %v9_v1, 0.0 }
   0x6   :  { %11 = vst [vmem:[%s33_s1] sm:$0xff] %v10_v2 }

</bundles_post_ra>
